<compile_context>
chip_gen: v7x
topology: tpu7x:2x2x1
jax: 0.10.0
libtpu: 0.0.40
codegen_flags: <defaults>
</compile_context>

<pallas_src>
import jax
import jax.numpy as jnp
from jax import lax
from jax.experimental import pallas as pl
from jax.experimental.pallas import tpu as pltpu


def _round_up(n: int, m: int) -> int:
    return ((n + m - 1) // m) * m


def clf_kernel(x_ref, w_ref, b_ref, o_ref):
    """One batch tile of sigmoid(x @ w^T + b).

    x_ref: (TB, Dp) activations (VMEM, pipelined over the batch grid)
    w_ref: (1, Dp)  weight row (VMEM, resident across the grid)
    b_ref: (1,)     bias scalar (SMEM)
    o_ref: (1, TB)  lane-dense output row for this tile
    """
    # MXU: contract the feature dim of both operands -> (1, TB), lane-dense.
    s = lax.dot_general(
        w_ref[...], x_ref[...],
        dimension_numbers=(((1,), (1,)), ((), ())),
        preferred_element_type=jnp.float32,
    )
    o_ref[...] = jax.nn.sigmoid(s + b_ref[0]).astype(o_ref.dtype)


def clf_forward(x, weight, bias, *, tb: int = 1024):
    """x: (B, D); weight: (1, D) [= nn.Linear.weight]; bias: (1,) -> (B,)"""
    B, D = x.shape
    Dp = _round_up(D, 128)                                    # lane-aligned K
    TB = _round_up(max(128, min(tb, _round_up(B, 128))), 128)  # batch tile
    num_tiles = pl.cdiv(B, TB)
    Bp = num_tiles * TB

    # Zero-pad to aligned shapes; zero padding keeps the contraction exact.
    if Bp != B or Dp != D:
        x = jnp.pad(x, ((0, Bp - B), (0, Dp - D)))
    w_row = jnp.pad(weight.reshape(1, D), ((0, 0), (0, Dp - D))).astype(x.dtype)
    b = bias.reshape(1).astype(jnp.float32)

    out = pl.pallas_call(
        clf_kernel,
        out_shape=jax.ShapeDtypeStruct((num_tiles, 1, TB), x.dtype),
        grid=(num_tiles,),
        in_specs=[
            pl.BlockSpec((TB, Dp), lambda i: (i, 0)),            # x tile
            pl.BlockSpec((1, Dp), lambda i: (0, 0)),             # weight (resident)
            pl.BlockSpec(memory_space=pltpu.MemorySpace.SMEM),   # bias scalar
        ],
        out_specs=pl.BlockSpec((None, 1, TB), lambda i: (i, 0, 0)),
        compiler_params=pltpu.CompilerParams(
            dimension_semantics=("parallel",)),
    )(x, w_row, b)

    # torch: x.squeeze(-1); drop batch padding.
    return out.reshape(Bp)[:B]


if __name__ == "__main__":
    input_size = 200   # module default
    batch = 8

    key = jax.random.PRNGKey(0)
    kx, kw, kb = jax.random.split(key, 3)

    x = jax.random.normal(kx, (batch, input_size), dtype=jnp.float32)

    # Deterministic nn.Linear(input_size, 1)-shaped parameters
    bound = 1.0 / (input_size ** 0.5)
    weight = jax.random.uniform(kw, (1, input_size), jnp.float32, -bound, bound)
    bias = jax.random.uniform(kb, (1,), jnp.float32, -bound, bound)

    z = clf_forward(x, weight, bias)
    jax.block_until_ready(z)

    ref = jax.nn.sigmoid(x @ weight.T + bias)[:, 0]
    assert z.shape == (batch,)
    assert jnp.allclose(z, ref, atol=1e-5, rtol=1e-5)

    # Exercise the gridded, ragged-batch path with a small tile (3 tiles).
    B2 = 300
    x2 = jax.random.normal(jax.random.PRNGKey(1), (B2, input_size), jnp.float32)
    z2 = clf_forward(x2, weight, bias, tb=128)
    jax.block_until_ready(z2)
    ref2 = jax.nn.sigmoid(x2 @ weight.T + bias)[:, 0]
    assert z2.shape == (B2,)
    assert jnp.allclose(z2, ref2, atol=1e-5, rtol=1e-5)

    print("KERNEL_OK")
</pallas_src>

<mosaic_0001>
module attributes {stable_mosaic.version = 11 : i64} {
  func.func @clf_kernel(%arg0: i32, %arg1: memref<128x256xf32, #tpu.memory_space<vmem>>, %arg2: memref<1x256xf32, #tpu.memory_space<vmem>>, %arg3: memref<1xf32, #tpu.memory_space<smem>>, %arg4: memref<1x1x128xf32, #tpu.memory_space<vmem>>) attributes {dimension_semantics = [#tpu.dimension_semantics<parallel>], iteration_bounds = array<i64: 1>, scalar_prefetch = 0 : i64, scratch_operands = 0 : i64, tpu.core_type = #tpu.core_type<tc>, window_params = [{transform_indices = @transform_0, window_bounds = array<i64: 128, 256>}, {pipeline_mode = #tpu.pipeline_mode<synchronous>, transform_indices = @transform_1, window_bounds = array<i64: 1, 256>}, {transform_indices = @transform_2, window_bounds = array<i64: 1>}, {transform_indices = @transform_3, window_bounds = array<i64: 1, 1, 128>}]} {
    %c0 = arith.constant 0 : index
    %c0_0 = arith.constant 0 : index
    %0 = vector.load %arg2[%c0, %c0_0] : memref<1x256xf32, #tpu.memory_space<vmem>>, vector<1x256xf32>
    %c0_1 = arith.constant 0 : index
    %c0_2 = arith.constant 0 : index
    %1 = vector.load %arg1[%c0_1, %c0_2] : memref<128x256xf32, #tpu.memory_space<vmem>>, vector<128x256xf32>
    %cst = arith.constant dense<0.000000e+00> : vector<1x128xf32>
    %2 = tpu.matmul %0, %1, %cst {dimension_numbers = #tpu.dot_dimension_numbers<[1], [1], [0], [0], [0, 0, 1, 0], [], []>} : vector<1x256xf32>, vector<128x256xf32>, vector<1x128xf32> -> vector<1x128xf32>
    %c0_3 = arith.constant 0 : index
    %3 = memref.load %arg3[%c0_3] : memref<1xf32, #tpu.memory_space<smem>>
    %4 = vector.broadcast %3 : f32 to vector<1x128xf32>
    %5 = arith.addf %2, %4 : vector<1x128xf32>
    %6 = arith.negf %5 : vector<1x128xf32>
    %7 = math.exp %6 : vector<1x128xf32>
    %cst_4 = arith.constant 1.000000e+00 : f32
    %8 = vector.broadcast %cst_4 : f32 to vector<1x128xf32>
    %9 = arith.addf %8, %7 : vector<1x128xf32>
    %10 = arith.divf %8, %9 : vector<1x128xf32>
    %c0_5 = arith.constant 0 : index
    %c0_6 = arith.constant 0 : index
    %c0_7 = arith.constant 0 : index
    %11 = vector.load %arg4[%c0_5, %c0_6, %c0_7] : memref<1x1x128xf32, #tpu.memory_space<vmem>>, vector<1x1x128xf32>
    %12 = vector.shape_cast %11 : vector<1x1x128xf32> to vector<1x128xf32>
    %13 = vector.shape_cast %10 : vector<1x128xf32> to vector<1x1x128xf32>
    tpu.vector_store %arg4[%c0_5, %c0_6, %c0_7], %13 {strides = array<i32>} : memref<1x1x128xf32, #tpu.memory_space<vmem>>, vector<1x1x128xf32>,
    return
  }
  func.func @transform_0(%arg0: i32) -> (i32, i32) {
    %c0_i32 = arith.constant 0 : i32
    %c0_i32_0 = arith.constant 0 : i32
    return %arg0, %c0_i32 : i32, i32
  }
  func.func @transform_1(%arg0: i32) -> (i32, i32) {
    %c0_i32 = arith.constant 0 : i32
    %c0_i32_0 = arith.constant 0 : i32
    %c0_i32_1 = arith.constant 0 : i32
    return %c0_i32, %c0_i32_0 : i32, i32
  }
  func.func @transform_2(%arg0: i32) -> i32 {
    %c0_i32 = arith.constant 0 : i32
    %c0_i32_0 = arith.constant 0 : i32
    return %c0_i32 : i32
  }
  func.func @transform_3(%arg0: i32) -> (i32, i32, i32) {
    %c0_i32 = arith.constant 0 : i32
    %c0_i32_0 = arith.constant 0 : i32
    %c0_i32_1 = arith.constant 0 : i32
    return %arg0, %c0_i32, %c0_i32_0 : i32, i32, i32
  }
}

</mosaic_0001>

<bundles_post_ra>
// kernel: tpu_custom_call.1
= control target key start
LH: loop header
LB: loop body
LE: loop exit
PB: predicated region body
PF: predicated region fallthrough
CT: control target
= control target key end

     0   :  { %9 = vsyncpa [#allocation4], 0  ;;  %s311_s0 = inlined_call_operand.hbm [shape: f32[128,256], index: 0, kind: input, shape index: {}]   ;;  %s312_s1 = inlined_call_operand.vmem [shape: f32[1,256], index: 1, kind: input, shape index: {}]   ;;  %s313_s2 = inlined_call_operand.<no memory space> [shape: f32[1], index: 2, kind: input, shape index: {}]   ;;  %s314_s3 = inlined_call_operand.hbm [shape: f32[1,1,128], index: 3, kind: output, shape index: {}]  }
   0x1   :  { %10 = vsyncpa [#allocation5], 0  ;;  %s257_s12 = smov [#allocation3]   ;;  %s209_s16 = scalar_lea.hbm %s311_s0, 4096 }
   0x2   :  { %s16_s13 = sshll.u32 %s257_s12, 4  ;;  %p210_p0 = scmp.ne.s32.totalorder %s311_s0, %s209_s16  ;;  %s17_s13 = int_to_ptr.vmem [resolvable:$true] %s16_s13 }
   0x3   :  { %p213_p1 = scmp.lt.u32.totalorder %s209_s16, %s311_s0 }
   0x5   :  { %p215_p2 = pnand %p213_p1, %p210_p0 }
   0x7   :  { %218 = shalt.err (!%p215_p2)
}
   0x8   :  { %s219_s21 = scalar_lea.vmem %s17_s13, 4096  ;;  %p224_p4 = scmp.lt.s32.totalorder %s17_s13, %s17_s13 }
   0x9   :  { %p220_p3 = scmp.ne.s32.totalorder %s17_s13, %s219_s21  ;;  %p225_p5 = scmp.lt.s32.totalorder %s219_s21, %s219_s21 }
   0xb   :  { %p226_p6 = por %p225_p5, %p224_p4 }
   0xd   :  { %p227_p7 = pnand %p226_p6, %p220_p3 }
   0xf   :  { %230 = shalt.err (!%p227_p7)
}
  0x10   :  { %s258_s22 = smov 256   ;;  %s259_s23 = smov 16  }
  0x11   :  { %22 = dma.hbm_to_vmem [thread:$0]  %s311_s0, 4096, %s17_s13, [#allocation4], %s258_s22, %s258_s22, %s259_s23  }
  0x12   :  { %253 = dma.done.wait [#allocation4], 4096  }
  0x13   :  { %254 = vsyncadd [#allocation4], 4294963200  ;;  %v66_v0 = vlaneseq  ;;  %v32_v1 = vld [vmem:[#allocation3 + $0x8] sm:$0xff]  ;;  %v34_v2 = vld [vmem:[#allocation3 + $0x18] sm:$0xff]  ;;  %v64_v55 = vstv %s313_s2  ;;  %s260_s28 = smov [#allocation6]  }
  0x14   :  { %v31_v3 = vld [vmem:[#allocation3] sm:$0xff]  ;;  %v169_v4 = vpack.c.bf16 %v34_v2, %v32_v1  ;;  %v33_v5 = vld [vmem:[#allocation3 + $0x10] sm:$0xff]  ;;  %v36_v6 = vld [vmem:[#allocation3 + $0x28] sm:$0xff]  ;;  %s159_s29 = sshll.u32 %s260_s28, 4  ;;  %s160_s29 = int_to_ptr.vmem [resolvable:$true] %s159_s29 }
  0x15   :  { %v38_v7 = vld [vmem:[#allocation3 + $0x38] sm:$0xff]  ;;  %v171_v8 = vpack.c.bf16 %v33_v5, %v31_v3  ;;  %v67_v10 = vshrl.u32 %v66_v0, 7  ;;  %v35_v11 = vld [vmem:[#allocation3 + $0x20] sm:$0xff]  ;;  %v37_v12 = vld [vmem:[#allocation3 + $0x30] sm:$0xff]  ;;  %s231_s30 = scalar_lea.vmem %s160_s29, 16  ;;  %s235_s4 = scalar_lea.vmem %s160_s29, 32 }
  0x16   :  { %v173_v9 = vpack.c.bf16 %v38_v7, %v36_v6  ;;  %170 = vmatprep.subr.bf16.mxu0 %v169_v4  ;;  %v40_v13 = vld [vmem:[#allocation3 + $0x48] sm:$0xff]  ;;  %v42_v14 = vld [vmem:[#allocation3 + $0x58] sm:$0xff]  ;;  %v175_v16 = vpack.c.bf16 %v37_v12, %v35_v11  ;;  %v30_v18 = vld [vmem:[%s312_s1] sm:$0x3]  ;;  %p232_p8 = scmp.ne.s32.totalorder %s160_s29, %s231_s30  ;;  %p236_p9 = scmp.lt.s32.totalorder %s160_s29, %s160_s29 }
  0x17   :  { %172 = vmatpush1.bf16.xpose.msra.mxu0 %v171_v8  ;;  %v72_v15 = vsub.s32 1, %v67_v10  ;;  %v177_v17 = vpack.c.bf16 %v42_v14, %v40_v13  ;;  %v39_v20 = vld [vmem:[#allocation3 + $0x40] sm:$0xff]  ;;  %v41_v21 = vld [vmem:[#allocation3 + $0x50] sm:$0xff]  ;;  %v44_v22 = vld [vmem:[#allocation3 + $0x68] sm:$0xff]  ;;  %v68_v53 = vsub.s32 0, %v67_v10  ;;  %p237_p10 = scmp.lt.s32.totalorder %s235_s4, %s231_s30 }
  0x18   :  { %174 = vmatprep.subr.bf16.mxu0 %v173_v9  ;;  %v46_v23 = vld [vmem:[#allocation3 + $0x78] sm:$0xff]  ;;  %v179_v24 = vpack.c.bf16 %v41_v21, %v39_v20  ;;  %v43_v26 = vld [vmem:[#allocation3 + $0x60] sm:$0xff]  ;;  %v45_v27 = vld [vmem:[#allocation3 + $0x70] sm:$0xff] }
  0x19   :  { %v73_v19 = vrot.slane %v30_v18, %v72_v15  ;;  %v181_v25 = vpack.c.bf16 %v46_v23, %v44_v22  ;;  %v48_v28 = vld [vmem:[#allocation3 + $0x88] sm:$0xff]  ;;  %v50_v29 = vld [vmem:[#allocation3 + $0x98] sm:$0xff]  ;;  %v183_v30 = vpack.c.bf16 %v45_v27, %v43_v26  ;;  %v47_v32 = vld [vmem:[#allocation3 + $0x80] sm:$0xff]  ;;  %v69_v54 = vrot.slane %v30_v18, %v68_v53  ;;  %p238_p11 = por %p237_p10, %p236_p9 }
  0x1a   :  { %v185_v31 = vpack.c.bf16 %v50_v29, %v48_v28  ;;  %v49_v33 = vld [vmem:[#allocation3 + $0x90] sm:$0xff]  ;;  %v52_v34 = vld [vmem:[#allocation3 + $0xa8] sm:$0xff]  ;;  %v54_v35 = vld [vmem:[#allocation3 + $0xb8] sm:$0xff] }
  0x1b   :  { %140 = vmatprep.mubr.f32.mxu0 %v73_v19  ;;  %v187_v36 = vpack.c.bf16 %v49_v33, %v47_v32  ;;  %v189_v37 = vpack.c.bf16 %v54_v35, %v52_v34  ;;  %v51_v38 = vld [vmem:[#allocation3 + $0xa0] sm:$0xff]  ;;  %v53_v39 = vld [vmem:[#allocation3 + $0xb0] sm:$0xff]  ;;  %v56_v40 = vld [vmem:[#allocation3 + $0xc8] sm:$0xff]  ;;  %p239_p12 = pnand %p238_p11, %p232_p8 }
  0x1c   :  { %v58_v41 = vld [vmem:[#allocation3 + $0xd8] sm:$0xff]  ;;  %v191_v42 = vpack.c.bf16 %v53_v39, %v51_v38  ;;  %v55_v44 = vld [vmem:[#allocation3 + $0xc0] sm:$0xff]  ;;  %v57_v45 = vld [vmem:[#allocation3 + $0xd0] sm:$0xff] }
  0x1d   :  { %v193_v43 = vpack.c.bf16 %v58_v41, %v56_v40  ;;  %v60_v46 = vld [vmem:[#allocation3 + $0xe8] sm:$0xff]  ;;  %v62_v47 = vld [vmem:[#allocation3 + $0xf8] sm:$0xff]  ;;  %v195_v48 = vpack.c.bf16 %v57_v45, %v55_v44  ;;  %v59_v50 = vld [vmem:[#allocation3 + $0xe0] sm:$0xff] }
  0x1e   :  { %v197_v49 = vpack.c.bf16 %v62_v47, %v60_v46  ;;  %v61_v51 = vld [vmem:[#allocation3 + $0xf0] sm:$0xff] }
  0x1f   :  { %176 = vmatpush1.bf16.xpose.msra.mxu0 %v175_v16  ;;  %v199_v52 = vpack.c.bf16 %v61_v51, %v59_v50 }
  0x20   :  { %178 = vmatprep.subr.bf16.mxu0 %v177_v17 }
  0x27   :  { %180 = vmatpush1.bf16.xpose.msra.mxu0 %v179_v24 }
  0x28   :  { %182 = vmatprep.subr.bf16.mxu0 %v181_v25 }
  0x2f   :  { %184 = vmatpush1.bf16.xpose.msra.mxu0 %v183_v30 }
  0x30   :  { %186 = vmatprep.subr.bf16.mxu0 %v185_v31 }
  0x37   :  { %188 = vmatpush1.bf16.xpose.msra.mxu0 %v187_v36 }
  0x38   :  { %190 = vmatprep.subr.bf16.mxu0 %v189_v37 }
  0x3f   :  { %192 = vmatpush1.bf16.xpose.msra.mxu0 %v191_v42 }
  0x40   :  { %194 = vmatprep.subr.bf16.mxu0 %v193_v43 }
  0x47   :  { %196 = vmatpush1.bf16.xpose.msra.mxu0 %v195_v48 }
  0x48   :  { %198 = vmatprep.subr.bf16.mxu0 %v197_v49 }
  0x4f   :  { %200 = vmatpush1.bf16.xpose.msra.mxu0 %v199_v52 }
  0x56   :  { %141 = vmatmul.mubr.f32.vlgmr.msra.gmra.mrb[0].mxu0 %v69_v54 }
 0x129   :  { %v142_v56 = vpop.f32.mrb[0].mxu0 }
 0x12a   :  { %v143_v57 = vadd.f32 %v142_v56, %v64_v55  ;;  %v144_v58 = vpop.f32.mrb[1].mxu0 }
 0x12c   :  { %v168_v59 = vmul.f32 -1.442695, %v143_v57 }
 0x12e   :  { %205 = vpow2.f32 %v168_v59 }
 0x138   :  { %v206_v60 = vpop.eup %205 }
 0x139   :  { %v149_v61 = vadd.f32 1.0, %v206_v60 }
 0x13b   :  { %207 = vrcp.f32 %v149_v61 }
 0x145   :  { %v208_v62 = vpop.eup %207 }
 0x146   :  { %152 = vst [vmem:[#allocation6] sm:$0x1] %v208_v62 }
 0x147   :  { %242 = shalt.err (!%p239_p12)
}
 0x148   :  { %s243_s6 = scalar_lea.hbm %s314_s3, 16 }
 0x149   :  { %p244_p13 = scmp.ne.s32.totalorder %s314_s3, %s243_s6  ;;  %p247_p0 = scmp.lt.u32.totalorder %s243_s6, %s314_s3 }
 0x14b   :  { %p249_p1 = pnand %p247_p0, %p244_p13 }
 0x14d   :  { %252 = shalt.err (!%p249_p1)
}
 0x14e   :  { %162 = dma.vmem_to_hbm [thread:$0]  %s160_s29, 16, %s314_s3, [#allocation5]  }
 0x14f   :  { %255 = dma.done.wait [#allocation5], 16  }
 0x150   :  { %256 = vsyncadd [#allocation5], 4294967280 }
 0x151   :  { %166 = vsyncpa [#allocation4], 1 }
 0x152   :  { %167 = vsyncpa [#allocation5], 1 }

</bundles_post_ra>
